<compile_context>
chip_gen: v7x
topology: tpu7x:2x2x1
jax: 0.10.0
libtpu: 0.0.40
codegen_flags: <defaults>
</compile_context>

<pallas_src>
import functools

import jax
import jax.numpy as jnp
from jax.experimental import pallas as pl
from jax.experimental.pallas import tpu as pltpu

KEY_OUTPUT = "metric_depth"

_ATAN_COEFFS = (0.99997726, -0.33262347, 0.19354346, -0.11643287, 0.05265332,
                -0.01172120)
_HALF_PI = 1.5707963267948966


def extract_key(prediction, key):
    if isinstance(prediction, dict):
        return prediction[key]
    return prediction


def _device_kind():
    try:
        return (getattr(jax.devices()[0], "device_kind", "") or "").lower()
    except Exception:
        return ""


def _gen_tuning():
    """Generation-aware block budget / VMEM limit / angle-path dtype."""
    kind = _device_kind()
    if "v7" in kind:
        # 64 MiB VMEM per TensorCore -> smaller budget; bf16 VPU/EUP available.
        return dict(max_block_pixels=256 * 1024,
                    vmem_limit_bytes=48 * 1024 * 1024,
                    bf16_angle=True)
    if "v6" in kind:
        return dict(max_block_pixels=512 * 1024,
                    vmem_limit_bytes=80 * 1024 * 1024,
                    bf16_angle=True)
    # v5e / older / unknown: HBM-bound, no bf16 VPU/EUP -> keep f32 angle path.
    return dict(max_block_pixels=512 * 1024,
                vmem_limit_bytes=80 * 1024 * 1024,
                bf16_angle=False)


def _keep_narrow_float(x):
    # Keep bf16/f32 streams as-is (upcast happens inside the kernel);
    # widen anything else to f32.
    if x.dtype == jnp.bfloat16 or x.dtype == jnp.float32:
        return x
    return x.astype(jnp.float32)


def _bilinear_align_corners(x, out_h, out_w):
    # Plain-JAX glue: F.interpolate(..., mode='bilinear', align_corners=True).
    # Only used when input spatial shape != target spatial shape.
    n, c, h, w = x.shape
    ys = jnp.linspace(0.0, h - 1.0, out_h) if out_h > 1 else jnp.zeros((out_h,), jnp.float32)
    xs = jnp.linspace(0.0, w - 1.0, out_w) if out_w > 1 else jnp.zeros((out_w,), jnp.float32)
    y0 = jnp.clip(jnp.floor(ys).astype(jnp.int32), 0, h - 1)
    y1 = jnp.clip(y0 + 1, 0, h - 1)
    x0 = jnp.clip(jnp.floor(xs).astype(jnp.int32), 0, w - 1)
    x1 = jnp.clip(x0 + 1, 0, w - 1)
    wy = (ys - y0.astype(ys.dtype))[:, None]
    wx = (xs - x0.astype(xs.dtype))[None, :]

    def gather(yi, xi):
        return x[:, :, yi, :][:, :, :, xi]

    top = gather(y0, x0) * (1.0 - wx) + gather(y0, x1) * wx
    bot = gather(y1, x0) * (1.0 - wx) + gather(y1, x1) * wx
    return top * (1.0 - wy) + bot * wy


def _lane_sum(v):
    # (B, H, W) -> (1, W): reduce batch + sublane dims, keep the lane dim.
    return jnp.sum(jnp.sum(v, axis=1), axis=0, keepdims=True)


def _atan(r):
    """Elementwise arctan from ops guaranteed to lower on every TPU generation.

    Odd minimax polynomial on [-1, 1] (max err ~1e-6 in f32) plus the
    atan(x) = pi/2 - atan(1/x) range reduction for |x| > 1.  Works in the
    dtype of `r` (f32 everywhere; bf16 on v6e/v7x for ~2x VALU throughput).
    """
    a = jnp.abs(r)
    big = a > 1.0
    # Reciprocal always in f32 on the EUP; cast back to the working dtype.
    inv_a = pl.reciprocal(a.astype(jnp.float32), approx=True).astype(r.dtype)
    z = jnp.where(big, inv_a, a)
    z2 = z * z
    acc = _ATAN_COEFFS[-1]
    for c in _ATAN_COEFFS[-2::-1]:
        acc = acc * z2 + c
    p = z * acc
    res = jnp.where(big, _HALF_PI - p, p)
    return jnp.where(r < 0, -res, res)


def _grad_l1_kernel(angle_dtype, pred_ref, tgt_ref, mask_ref, interior_ref, out_ref):
    p = pred_ref[...].astype(jnp.float32)             # (B, H, Wp)
    t = tgt_ref[...].astype(jnp.float32)
    m = mask_ref[...].astype(jnp.float32)             # {0, 1}
    interior = interior_ref[...].astype(jnp.float32)  # (1, H, Wp), row/col 0 excluded

    def grads(x):
        left = pltpu.roll(x, 1, 2)   # left[i, j] = x[i, j-1]  (wraps at j = 0)
        up = pltpu.roll(x, 1, 1)     # up[i, j]   = x[i-1, j]  (wraps at i = 0)
        dx = x - left
        dy = x - up
        mag = dx * dx + dy * dy
        ratio = dy * pl.reciprocal(dx + 1e-10, approx=True)   # EUP
        ang = _atan(ratio.astype(angle_dtype)).astype(jnp.float32)
        return mag, ang

    mag_p, ang_p = grads(p)
    mag_t, ang_t = grads(t)

    m_left = pltpu.roll(m, 1, 2)
    m_up = pltpu.roll(m, 1, 1)
    # grad_mask; the wrapped first row/col are removed by the interior factor.
    mg = interior * (m * m_left * m_up)

    d_mag = mg * jnp.abs(mag_p - mag_t)
    d_ang = mg * jnp.abs(ang_p - ang_t)

    # Single (3, Wp) store of the lane-partial sums: [sum|dmag|, sum|dang|, count].
    out_ref[0] = jnp.concatenate(
        [_lane_sum(d_mag), _lane_sum(d_ang), _lane_sum(mg)], axis=0)


def grad_l1_loss(inp, target, mask, interpolate=True, return_interpolated=False,
                 block_batch=None, hbm_input_dtype=None):
    """Forward of GradL1Loss. `inp` may be an array or a dict with KEY_OUTPUT."""
    inp = extract_key(inp, KEY_OUTPUT)
    if inp.shape[-1] != target.shape[-1] and interpolate:
        inp = _bilinear_align_corners(inp, target.shape[-2], target.shape[-1])
    intr_input = inp

    n, c, h, w = target.shape
    nc = n * c
    tune = _gen_tuning()

    pred = _keep_narrow_float(inp)
    tgt = _keep_narrow_float(target)
    if hbm_input_dtype is not None:
        # Optional HBM narrowing (e.g. bf16 on mem-bound v5e); in-kernel compute
        # stays f32, only the HBM representation changes.
        pred = pred.astype(hbm_input_dtype)
        tgt = tgt.astype(hbm_input_dtype)
    pred = pred.reshape(nc, h, w)
    tgt = tgt.reshape(nc, h, w)
    msk = mask.reshape(nc, h, w).astype(jnp.int8)     # 1 byte/px mask stream

    # Pad the lane dim (W) up to a multiple of 128; padded columns carry
    # mask == 0 so they contribute nothing to any sum.
    w_pad = ((w + 127) // 128) * 128
    if w_pad != w:
        pred = jnp.pad(pred, ((0, 0), (0, 0), (0, w_pad - w)))
        tgt = jnp.pad(tgt, ((0, 0), (0, 0), (0, w_pad - w)))
        msk = jnp.pad(msk, ((0, 0), (0, 0), (0, w_pad - w)))

    # Interior mask (excludes the wrapped first gradient row / column); its
    # constant index_map means it is DMA'd only once.
    interior = ((jnp.arange(h)[:, None] >= 1) & (jnp.arange(w_pad)[None, :] >= 1))
    interior = interior.astype(jnp.int8)[None]        # (1, h, w_pad)

    if block_batch is None:
        b_tile = max(1, min(nc, tune["max_block_pixels"] // (h * w_pad)))
        if nc >= 2:
            # Keep >= 2 grid blocks so the "parallel" axis can shard across both
            # v7x TensorCores (zero cost on single-TC v5e/v6e).
            b_tile = min(b_tile, pl.cdiv(nc, 2))
    else:
        b_tile = max(1, min(nc, int(block_batch)))
    # TODO(synk): images where h * w_pad exceeds the per-block budget still run
    # as one (1, h, w_pad) block per step; very large images would need a second
    # grid axis over H with a 1-row halo to keep VMEM bounded.
    g = pl.cdiv(nc, b_tile)
    pad_b = g * b_tile - nc
    if pad_b:
        # Padded slices have mask == 0 -> contribute nothing to any sum.
        pred = jnp.pad(pred, ((0, pad_b), (0, 0), (0, 0)))
        tgt = jnp.pad(tgt, ((0, pad_b), (0, 0), (0, 0)))
        msk = jnp.pad(msk, ((0, pad_b), (0, 0), (0, 0)))

    angle_dtype = jnp.bfloat16 if tune["bf16_angle"] else jnp.float32
    kernel = functools.partial(_grad_l1_kernel, angle_dtype)

    partials = pl.pallas_call(
        kernel,
        out_shape=jax.ShapeDtypeStruct((g, 3, w_pad), jnp.float32),
        grid_spec=pltpu.PrefetchScalarGridSpec(
            num_scalar_prefetch=0,
            grid=(g,),
            in_specs=[
                pl.BlockSpec((b_tile, h, w_pad), lambda b: (b, 0, 0)),
                pl.BlockSpec((b_tile, h, w_pad), lambda b: (b, 0, 0)),
                pl.BlockSpec((b_tile, h, w_pad), lambda b: (b, 0, 0)),
                pl.BlockSpec((1, h, w_pad), lambda b: (0, 0, 0)),
            ],
            out_specs=pl.BlockSpec((1, 3, w_pad), lambda b: (b, 0, 0)),
        ),
        compiler_params=pltpu.CompilerParams(
            dimension_semantics=("parallel",),        # blocks are independent
            vmem_limit_bytes=tune["vmem_limit_bytes"],
        ),
    )(pred, tgt, msk, interior)

    sums = jnp.sum(partials, axis=(0, 2))  # (3,) = [sum|dmag|, sum|dang|, count]
    cnt = sums[2]                          # cnt == 0 -> NaN (matches empty selection)
    loss = (sums[0] + sums[1]) / cnt

    if not return_interpolated:
        return loss
    return loss, intr_input


def _reference_loss(pred, target, mask):
    # Pure-JAX reference mirroring the PyTorch module, for a sanity check.
    def grad(x):
        dx = x[..., 1:, 1:] - x[..., 1:, :-1]
        dy = x[..., 1:, 1:] - x[..., :-1, 1:]
        return dx * dx + dy * dy, jnp.arctan(dy / (dx + 1e-10))

    mg = (mask[..., 1:, 1:] & mask[..., 1:, :-1] & mask[..., :-1, 1:]).astype(jnp.float32)
    mag_p, ang_p = grad(pred)
    mag_t, ang_t = grad(target)
    cnt = jnp.sum(mg)
    l1 = jnp.sum(mg * jnp.abs(mag_p - mag_t)) / cnt
    l2 = jnp.sum(mg * jnp.abs(ang_p - ang_t)) / cnt
    return l1 + l2


if __name__ == "__main__":
    # GradL1Loss has no learnable parameters, so nothing to initialize.
    key = jax.random.PRNGKey(0)
    k1, k2, k3, k4, k5, k6 = jax.random.split(key, 6)

    # Case 1: N*C = 2 -> two grid blocks (exercises the parallel / megacore path
    # and the W -> 128 lane padding).
    N, C, H, W = 2, 1, 16, 16  # depth maps: N x 1 x H x W
    pred = jax.random.uniform(k1, (N, C, H, W), jnp.float32, 0.1, 2.0)
    target = jax.random.uniform(k2, (N, C, H, W), jnp.float32, 0.1, 2.0)
    mask = jax.random.uniform(k3, (N, C, H, W), jnp.float32) > 0.2  # bool validity

    loss = grad_l1_loss({KEY_OUTPUT: pred}, target, mask)
    loss = jax.block_until_ready(loss)
    ref = _reference_loss(pred, target, mask)
    # 5e-3 tolerance: the angle path runs in bf16 on v6e/v7x (see _gen_tuning).
    assert jnp.allclose(loss, ref, rtol=5e-3, atol=5e-3), (loss, ref)

    # Case 2: N*C = 5 with block_batch=2 -> 3 blocks, one padded batch slice.
    N2, C2 = 5, 1
    pred2 = jax.random.uniform(k4, (N2, C2, H, W), jnp.float32, 0.1, 2.0)
    target2 = jax.random.uniform(k5, (N2, C2, H, W), jnp.float32, 0.1, 2.0)
    mask2 = jax.random.uniform(k6, (N2, C2, H, W), jnp.float32) > 0.2
    loss2 = grad_l1_loss(pred2, target2, mask2, block_batch=2)
    loss2 = jax.block_until_ready(loss2)
    ref2 = _reference_loss(pred2, target2, mask2)
    assert jnp.allclose(loss2, ref2, rtol=5e-3, atol=5e-3), (loss2, ref2)

    print("KERNEL_OK")
</pallas_src>

<mosaic_0001>
module attributes {stable_mosaic.version = 11 : i64} {
  func.func @_grad_l1_kernel(%arg0: i32, %arg1: memref<1x16x128xf32, #tpu.memory_space<vmem>>, %arg2: memref<1x16x128xf32, #tpu.memory_space<vmem>>, %arg3: memref<1x16x128xi8, #tpu.memory_space<vmem>>, %arg4: memref<1x16x128xi8, #tpu.memory_space<vmem>>, %arg5: memref<1x3x128xf32, #tpu.memory_space<vmem>>) attributes {dimension_semantics = [#tpu.dimension_semantics<parallel>], iteration_bounds = array<i64: 2>, scalar_prefetch = 0 : i64, scratch_operands = 0 : i64, tpu.core_type = #tpu.core_type<tc>, window_params = [{transform_indices = @transform_0, window_bounds = array<i64: 1, 16, 128>}, {transform_indices = @transform_1, window_bounds = array<i64: 1, 16, 128>}, {transform_indices = @transform_2, window_bounds = array<i64: 1, 16, 128>}, {pipeline_mode = #tpu.pipeline_mode<synchronous>, transform_indices = @transform_3, window_bounds = array<i64: 1, 16, 128>}, {transform_indices = @transform_4, window_bounds = array<i64: 1, 3, 128>}]} {
    %c0 = arith.constant 0 : index
    %c0_0 = arith.constant 0 : index
    %c0_1 = arith.constant 0 : index
    %0 = vector.load %arg1[%c0, %c0_0, %c0_1] : memref<1x16x128xf32, #tpu.memory_space<vmem>>, vector<1x16x128xf32>
    %c0_2 = arith.constant 0 : index
    %c0_3 = arith.constant 0 : index
    %c0_4 = arith.constant 0 : index
    %1 = vector.load %arg2[%c0_2, %c0_3, %c0_4] : memref<1x16x128xf32, #tpu.memory_space<vmem>>, vector<1x16x128xf32>
    %c0_5 = arith.constant 0 : index
    %c0_6 = arith.constant 0 : index
    %c0_7 = arith.constant 0 : index
    %2 = vector.load %arg3[%c0_5, %c0_6, %c0_7] : memref<1x16x128xi8, #tpu.memory_space<vmem>>, vector<1x16x128xi8>
    %3 = arith.sitofp %2 : vector<1x16x128xi8> to vector<1x16x128xf32>
    %c0_8 = arith.constant 0 : index
    %c0_9 = arith.constant 0 : index
    %c0_10 = arith.constant 0 : index
    %4 = vector.load %arg4[%c0_8, %c0_9, %c0_10] : memref<1x16x128xi8, #tpu.memory_space<vmem>>, vector<1x16x128xi8>
    %5 = arith.sitofp %4 : vector<1x16x128xi8> to vector<1x16x128xf32>
    %c1_i32 = arith.constant 1 : i32
    %6 = tpu.dynamic_rotate %0 by %c1_i32 dim 2 : vector<1x16x128xf32>, i32 -> vector<1x16x128xf32>
    %c1_i32_11 = arith.constant 1 : i32
    %7 = tpu.dynamic_rotate %0 by %c1_i32_11 dim 1 : vector<1x16x128xf32>, i32 -> vector<1x16x128xf32>
    %8 = arith.subf %0, %6 : vector<1x16x128xf32>
    %9 = arith.subf %0, %7 : vector<1x16x128xf32>
    %10 = arith.mulf %8, %8 : vector<1x16x128xf32>
    %11 = arith.mulf %9, %9 : vector<1x16x128xf32>
    %12 = arith.addf %10, %11 : vector<1x16x128xf32>
    %cst = arith.constant 1.000000e-10 : f32
    %13 = vector.broadcast %cst : f32 to vector<1x16x128xf32>
    %14 = arith.addf %8, %13 : vector<1x16x128xf32>
    %15 = tpu.reciprocal %14 {approx = true} : vector<1x16x128xf32> -> vector<1x16x128xf32>
    %16 = arith.mulf %9, %15 : vector<1x16x128xf32>
    %17 = math.absf %16 : vector<1x16x128xf32>
    %cst_12 = arith.constant 1.000000e+00 : f32
    %18 = vector.broadcast %cst_12 : f32 to vector<1x16x128xf32>
    %19 = arith.cmpf ogt, %17, %18 : vector<1x16x128xf32>
    %20 = tpu.reciprocal %17 {approx = true} : vector<1x16x128xf32> -> vector<1x16x128xf32>
    %21 = arith.select %19, %20, %17 : vector<1x16x128xi1>, vector<1x16x128xf32>
    %22 = arith.mulf %21, %21 : vector<1x16x128xf32>
    %cst_13 = arith.constant -1.172120e-02 : f32
    %23 = vector.broadcast %cst_13 : f32 to vector<1x16x128xf32>
    %24 = arith.mulf %23, %22 : vector<1x16x128xf32>
    %cst_14 = arith.constant 0.0526533201 : f32
    %25 = vector.broadcast %cst_14 : f32 to vector<1x16x128xf32>
    %26 = arith.addf %24, %25 : vector<1x16x128xf32>
    %27 = arith.mulf %26, %22 : vector<1x16x128xf32>
    %cst_15 = arith.constant -0.116432868 : f32
    %28 = vector.broadcast %cst_15 : f32 to vector<1x16x128xf32>
    %29 = arith.addf %27, %28 : vector<1x16x128xf32>
    %30 = arith.mulf %29, %22 : vector<1x16x128xf32>
    %cst_16 = arith.constant 0.193543464 : f32
    %31 = vector.broadcast %cst_16 : f32 to vector<1x16x128xf32>
    %32 = arith.addf %30, %31 : vector<1x16x128xf32>
    %33 = arith.mulf %32, %22 : vector<1x16x128xf32>
    %cst_17 = arith.constant -0.332623482 : f32
    %34 = vector.broadcast %cst_17 : f32 to vector<1x16x128xf32>
    %35 = arith.addf %33, %34 : vector<1x16x128xf32>
    %36 = arith.mulf %35, %22 : vector<1x16x128xf32>
    %cst_18 = arith.constant 0.999977231 : f32
    %37 = vector.broadcast %cst_18 : f32 to vector<1x16x128xf32>
    %38 = arith.addf %36, %37 : vector<1x16x128xf32>
    %39 = arith.mulf %21, %38 : vector<1x16x128xf32>
    %cst_19 = arith.constant 1.57079637 : f32
    %40 = vector.broadcast %cst_19 : f32 to vector<1x16x128xf32>
    %41 = arith.subf %40, %39 : vector<1x16x128xf32>
    %42 = arith.select %19, %41, %39 : vector<1x16x128xi1>, vector<1x16x128xf32>
    %cst_20 = arith.constant 0.000000e+00 : f32
    %43 = vector.broadcast %cst_20 : f32 to vector<1x16x128xf32>
    %44 = arith.cmpf olt, %16, %43 : vector<1x16x128xf32>
    %cst_21 = arith.constant 0.000000e+00 : f32
    %45 = vector.broadcast %cst_21 : f32 to vector<1x16x128xf32>
    %46 = arith.subf %45, %42 : vector<1x16x128xf32>
    %47 = arith.select %44, %46, %42 : vector<1x16x128xi1>, vector<1x16x128xf32>
    %c1_i32_22 = arith.constant 1 : i32
    %48 = tpu.dynamic_rotate %1 by %c1_i32_22 dim 2 : vector<1x16x128xf32>, i32 -> vector<1x16x128xf32>
    %c1_i32_23 = arith.constant 1 : i32
    %49 = tpu.dynamic_rotate %1 by %c1_i32_23 dim 1 : vector<1x16x128xf32>, i32 -> vector<1x16x128xf32>
    %50 = arith.subf %1, %48 : vector<1x16x128xf32>
    %51 = arith.subf %1, %49 : vector<1x16x128xf32>
    %52 = arith.mulf %50, %50 : vector<1x16x128xf32>
    %53 = arith.mulf %51, %51 : vector<1x16x128xf32>
    %54 = arith.addf %52, %53 : vector<1x16x128xf32>
    %cst_24 = arith.constant 1.000000e-10 : f32
    %55 = vector.broadcast %cst_24 : f32 to vector<1x16x128xf32>
    %56 = arith.addf %50, %55 : vector<1x16x128xf32>
    %57 = tpu.reciprocal %56 {approx = true} : vector<1x16x128xf32> -> vector<1x16x128xf32>
    %58 = arith.mulf %51, %57 : vector<1x16x128xf32>
    %59 = math.absf %58 : vector<1x16x128xf32>
    %cst_25 = arith.constant 1.000000e+00 : f32
    %60 = vector.broadcast %cst_25 : f32 to vector<1x16x128xf32>
    %61 = arith.cmpf ogt, %59, %60 : vector<1x16x128xf32>
    %62 = tpu.reciprocal %59 {approx = true} : vector<1x16x128xf32> -> vector<1x16x128xf32>
    %63 = arith.select %61, %62, %59 : vector<1x16x128xi1>, vector<1x16x128xf32>
    %64 = arith.mulf %63, %63 : vector<1x16x128xf32>
    %cst_26 = arith.constant -1.172120e-02 : f32
    %65 = vector.broadcast %cst_26 : f32 to vector<1x16x128xf32>
    %66 = arith.mulf %65, %64 : vector<1x16x128xf32>
    %cst_27 = arith.constant 0.0526533201 : f32
    %67 = vector.broadcast %cst_27 : f32 to vector<1x16x128xf32>
    %68 = arith.addf %66, %67 : vector<1x16x128xf32>
    %69 = arith.mulf %68, %64 : vector<1x16x128xf32>
    %cst_28 = arith.constant -0.116432868 : f32
    %70 = vector.broadcast %cst_28 : f32 to vector<1x16x128xf32>
    %71 = arith.addf %69, %70 : vector<1x16x128xf32>
    %72 = arith.mulf %71, %64 : vector<1x16x128xf32>
    %cst_29 = arith.constant 0.193543464 : f32
    %73 = vector.broadcast %cst_29 : f32 to vector<1x16x128xf32>
    %74 = arith.addf %72, %73 : vector<1x16x128xf32>
    %75 = arith.mulf %74, %64 : vector<1x16x128xf32>
    %cst_30 = arith.constant -0.332623482 : f32
    %76 = vector.broadcast %cst_30 : f32 to vector<1x16x128xf32>
    %77 = arith.addf %75, %76 : vector<1x16x128xf32>
    %78 = arith.mulf %77, %64 : vector<1x16x128xf32>
    %cst_31 = arith.constant 0.999977231 : f32
    %79 = vector.broadcast %cst_31 : f32 to vector<1x16x128xf32>
    %80 = arith.addf %78, %79 : vector<1x16x128xf32>
    %81 = arith.mulf %63, %80 : vector<1x16x128xf32>
    %cst_32 = arith.constant 1.57079637 : f32
    %82 = vector.broadcast %cst_32 : f32 to vector<1x16x128xf32>
    %83 = arith.subf %82, %81 : vector<1x16x128xf32>
    %84 = arith.select %61, %83, %81 : vector<1x16x128xi1>, vector<1x16x128xf32>
    %cst_33 = arith.constant 0.000000e+00 : f32
    %85 = vector.broadcast %cst_33 : f32 to vector<1x16x128xf32>
    %86 = arith.cmpf olt, %58, %85 : vector<1x16x128xf32>
    %cst_34 = arith.constant 0.000000e+00 : f32
    %87 = vector.broadcast %cst_34 : f32 to vector<1x16x128xf32>
    %88 = arith.subf %87, %84 : vector<1x16x128xf32>
    %89 = arith.select %86, %88, %84 : vector<1x16x128xi1>, vector<1x16x128xf32>
    %c1_i32_35 = arith.constant 1 : i32
    %90 = tpu.dynamic_rotate %3 by %c1_i32_35 dim 2 : vector<1x16x128xf32>, i32 -> vector<1x16x128xf32>
    %c1_i32_36 = arith.constant 1 : i32
    %91 = tpu.dynamic_rotate %3 by %c1_i32_36 dim 1 : vector<1x16x128xf32>, i32 -> vector<1x16x128xf32>
    %92 = arith.mulf %3, %90 : vector<1x16x128xf32>
    %93 = arith.mulf %92, %91 : vector<1x16x128xf32>
    %94 = arith.mulf %5, %93 : vector<1x16x128xf32>
    %95 = arith.subf %12, %54 : vector<1x16x128xf32>
    %96 = math.absf %95 : vector<1x16x128xf32>
    %97 = arith.mulf %94, %96 : vector<1x16x128xf32>
    %98 = arith.subf %47, %89 : vector<1x16x128xf32>
    %99 = math.absf %98 : vector<1x16x128xf32>
    %100 = arith.mulf %94, %99 : vector<1x16x128xf32>
    %cst_37 = arith.constant dense<0.000000e+00> : vector<1x128xf32>
    %101 = vector.multi_reduction <add>, %97, %cst_37 [1] : vector<1x16x128xf32> to vector<1x128xf32>
    %cst_38 = arith.constant dense<0.000000e+00> : vector<128xf32>
    %102 = vector.multi_reduction <add>, %101, %cst_38 [0] : vector<1x128xf32> to vector<128xf32>
    %103 = vector.shape_cast %102 : vector<128xf32> to vector<1x128xf32>
    %cst_39 = arith.constant dense<0.000000e+00> : vector<1x128xf32>
    %104 = vector.multi_reduction <add>, %100, %cst_39 [1] : vector<1x16x128xf32> to vector<1x128xf32>
    %cst_40 = arith.constant dense<0.000000e+00> : vector<128xf32>
    %105 = vector.multi_reduction <add>, %104, %cst_40 [0] : vector<1x128xf32> to vector<128xf32>
    %106 = vector.shape_cast %105 : vector<128xf32> to vector<1x128xf32>
    %cst_41 = arith.constant dense<0.000000e+00> : vector<1x128xf32>
    %107 = vector.multi_reduction <add>, %94, %cst_41 [1] : vector<1x16x128xf32> to vector<1x128xf32>
    %cst_42 = arith.constant dense<0.000000e+00> : vector<128xf32>
    %108 = vector.multi_reduction <add>, %107, %cst_42 [0] : vector<1x128xf32> to vector<128xf32>
    %109 = vector.shape_cast %108 : vector<128xf32> to vector<1x128xf32>
    %110 = tpu.concatenate %103, %106, %109 in 0 : vector<1x128xf32>, vector<1x128xf32>, vector<1x128xf32> -> vector<3x128xf32>
    %c0_43 = arith.constant 0 : index
    %c0_44 = arith.constant 0 : index
    %c0_45 = arith.constant 0 : index
    %111 = vector.load %arg5[%c0_43, %c0_44, %c0_45] : memref<1x3x128xf32, #tpu.memory_space<vmem>>, vector<1x3x128xf32>
    %112 = vector.shape_cast %111 : vector<1x3x128xf32> to vector<3x128xf32>
    %113 = vector.shape_cast %110 : vector<3x128xf32> to vector<1x3x128xf32>
    tpu.vector_store %arg5[%c0_43, %c0_44, %c0_45], %113 {strides = array<i32>} : memref<1x3x128xf32, #tpu.memory_space<vmem>>, vector<1x3x128xf32>,
    return
  }
  func.func @transform_0(%arg0: i32) -> (i32, i32, i32) {
    %c0_i32 = arith.constant 0 : i32
    %c0_i32_0 = arith.constant 0 : i32
    %c0_i32_1 = arith.constant 0 : i32
    return %arg0, %c0_i32, %c0_i32_0 : i32, i32, i32
  }
  func.func @transform_1(%arg0: i32) -> (i32, i32, i32) {
    %c0_i32 = arith.constant 0 : i32
    %c0_i32_0 = arith.constant 0 : i32
    %c0_i32_1 = arith.constant 0 : i32
    return %arg0, %c0_i32, %c0_i32_0 : i32, i32, i32
  }
  func.func @transform_2(%arg0: i32) -> (i32, i32, i32) {
    %c0_i32 = arith.constant 0 : i32
    %c0_i32_0 = arith.constant 0 : i32
    %c0_i32_1 = arith.constant 0 : i32
    return %arg0, %c0_i32, %c0_i32_0 : i32, i32, i32
  }
  func.func @transform_3(%arg0: i32) -> (i32, i32, i32) {
    %c0_i32 = arith.constant 0 : i32
    %c0_i32_0 = arith.constant 0 : i32
    %c0_i32_1 = arith.constant 0 : i32
    %c0_i32_2 = arith.constant 0 : i32
    return %c0_i32, %c0_i32_0, %c0_i32_1 : i32, i32, i32
  }
  func.func @transform_4(%arg0: i32) -> (i32, i32, i32) {
    %c0_i32 = arith.constant 0 : i32
    %c0_i32_0 = arith.constant 0 : i32
    %c0_i32_1 = arith.constant 0 : i32
    return %arg0, %c0_i32, %c0_i32_0 : i32, i32, i32
  }
}

</mosaic_0001>

<bundles_post_ra>
// kernel: tpu_custom_call.1
= control target key start
LH: loop header
LB: loop body
LE: loop exit
PB: predicated region body
PF: predicated region fallthrough
CT: control target
= control target key end

     0   :  { %s1450_s0 = inlined_call_operand.hbm [shape: f32[2,16,128], index: 0, kind: input, shape index: {}]   ;;  %s1451_s1 = inlined_call_operand.hbm [shape: f32[2,16,128], index: 1, kind: input, shape index: {}]   ;;  %s1452_s2 = inlined_call_operand.hbm [shape: s8[2,16,128], index: 2, kind: input, shape index: {}]   ;;  %s1453_s3 = inlined_call_operand.hbm [shape: s8[1,16,128], index: 3, kind: input, shape index: {}]   ;;  %s1454_s4 = inlined_call_operand.hbm [shape: f32[2,3,128], index: 4, kind: output, shape index: {}]  }
   0x1   :  { %1469 = sst [smem:[#allocation18_spill]] %s1451_s1 }
   0x2   :  { %9 = vsyncpa [#allocation3], 0 }
   0x3   :  { %11 = vsyncpa [#allocation3 + $0x1], 0 }
   0x4   :  { %12 = vsyncpa [#allocation6], 0 }
   0x5   :  { %14 = vsyncpa [#allocation6 + $0x1], 0 }
   0x6   :  { %15 = vsyncpa [#allocation9], 0 }
   0x7   :  { %16 = vsyncpa [#allocation4], 0 }
   0x8   :  { %18 = vsyncpa [#allocation4 + $0x1], 0  ;;  %s1002_s15 = smov 0   ;;  %s1004_s16 = smov 0  }
   0x9   :  { %s1006_s17 = smov 0   ;;  %s1008_s18 = smov 0  }
   0xa LB: > { %1470 = sst [smem:[#allocation15_spill]] %s961_s17  ;;  %s1023_s19 = sadd.s32 1, %s965_s18   ;;  %s965_s18 = sphi %s1008_s18, %s1494_s18   ;;  %s961_s17 = sphi %s1006_s17, %s1496_s17   ;;  %s957_s16 = sphi %s1004_s16, %s1498_s16   ;;  %s953_s15 = sphi %s1002_s15, %s1497_s15  }
   0xb   : > { %1471 = sst [smem:[#allocation16_spill]] %s1023_s19  ;;  %s31_s20 = sadd.s32 1, %s961_s17 }
   0xc   : > { %s28_s21 = ssub.s32 %s965_s18, %s1023_s19  ;;  %p1455_p0 = scmp.ne.s32.totalorder %s961_s17, %s957_s16 }
   0xd   : > { %p29_p1 = scmp.eq.s32.totalorder %s28_s21, 0  ;;  %p39_p2 = scmp.eq.s32.totalorder %s965_s18, 0 }
   0xe   : > { %p716_p4 = scmp.lt.s32.totalorder %s965_s18, 2  ;;  %s1040_s23 = sand.u32 1, %s961_s17  }
   0xf   : > { %s1034_s22 = scalar_select %p29_p1, %s961_s17, %s31_s20  }
  0x10   : > { %p40_p5 = por %p39_p2, %p1455_p0  ;;  %s655_s24 = sshll.u32 %s1040_s23, 4 }
  0x11   : > { %1472 = sst [smem:[#allocation17_spill]] %s1034_s22  ;;  %s674_s25 = sshll.u32 %s965_s18, 8 }
  0x12   : > { %p1044_p6 = pnand %p716_p4, %p40_p5  ;;  %s201_s27 = sand.u32 1, %s965_s18  }
  0x13   : > { %s1474_s1 = sld [smem:[#allocation18_spill]]  ;;  %s205_s5 = scalar_lea.vmem [#allocation5], %s655_s24 }
  0x14   : > { %s1473_s26 = scalar_select %p1044_p6, 1, 0 }
  0x15   : > { %s212_s6 = sshll.u32 %s205_s5, 4  ;;  %s1060_s7 = scalar_lea.sflag [#allocation6], %s201_s27  ;;  %s1058_s6 = int_to_ptr.vmem [resolvable:$true] %s212_s6 }
  0x16   : > { %p1066_p8 = pneg %p1044_p6 }
  0x18   : > { %s1475_s9 = scalar_select %p1066_p8, 1, 0 }
  0x19   : > { %s1054_s30 = scalar_lea.hbm %s1474_s1, %s674_s25  ;;  %s778_s12 = scalar_lea.hbm %s1474_s1, 512 }
  0x1a   : > { %s773_s8 = scalar_lea.hbm %s1054_s30, 256  ;;  %p779_p11 = scmp.lt.u32.totalorder %s1054_s30, %s1474_s1 }
  0x1b   : > { %p774_p7 = scmp.ne.s32.totalorder %s1054_s30, %s773_s8  ;;  %p780_p12 = scmp.lt.u32.totalorder %s778_s12, %s773_s8 }
  0x1c   : > { %p782_p1 = scmp.lt.u32.totalorder %s773_s8, %s1054_s30 }
  0x1d   : > { %p776_p9 = pnand %p1066_p8, %p774_p7  ;;  %p781_p13 = por %p780_p12, %p779_p11 }
  0x1f   : > { %p777_p10 = pneg %p776_p9  ;;  %p783_p2 = por %p782_p1, %p781_p13 }
  0x21   : > { %p784_p4 = pnand %p783_p2, %p777_p10 }
  0x23   : > { %787 = shalt.err (!%p784_p4)
}
  0x24   : > { %s788_s20 = scalar_lea.vmem %s1058_s6, 256  ;;  %s967_s21 = smov [#allocation5]  }
  0x25   : > { %p789_p5 = scmp.ne.s32.totalorder %s1058_s6, %s788_s20  ;;  %s793_s27 = sshll.u32 %s967_s21, 4  ;;  %s794_s27 = int_to_ptr.vmem [resolvable:$false] %s793_s27 }
  0x26   : > { %s795_s28 = scalar_lea.vmem %s794_s27, 512  ;;  %p796_p3 = scmp.lt.s32.totalorder %s1058_s6, %s794_s27 }
  0x27   : > { %p791_p7 = pnand %p789_p5, %p1066_p8  ;;  %p797_p0 = scmp.lt.s32.totalorder %s795_s28, %s788_s20 }
  0x29   : > { %p792_p9 = pneg %p791_p7  ;;  %p798_p11 = por %p797_p0, %p796_p3 }
  0x2b   : > { %p799_p12 = pnand %p798_p11, %p792_p9 }
  0x2d   : > { %802 = shalt.err (!%p799_p12)
}
  0x2e   : > { %s1456_s29 = smov 128   ;;  %s1457_s5 = smov 8  }
  0x2f   : > { %707 = dma.hbm_to_vmem [thread:$0]  (!%p1044_p6), %s1054_s30, 256, %s1058_s6, %s1060_s7, %s1456_s29, %s1456_s29, %s1457_s5  }
  0x30   : > { %s1094_s8 = sadd.s32 4294967295, %s965_s18   ;;  %s651_s10 = sadd.s32 4294967294, %s965_s18  }
  0x31   : > { %p44_p0 = scmp.ne.s32.totalorder %s957_s16, %s953_s15  ;;  %p1459_p3 = scmp.eq.s32.totalorder %s1094_s8, 0 }
  0x32   : > { %p141_p10 = scmp.eq.s32.totalorder %s1094_s8, 1  ;;  %p147_p13 = scmp.eq.s32.totalorder %s651_s10, 1 }
  0x33   : > { %p1103_p1 = por %p1459_p3, %p44_p0  ;;  %p652_p2 = scmp.ge.s32.totalorder %s965_s18, 1 }
  0x34   : > { %p1477_p4 = scmp.ne.s32.totalorder %s961_s17, %s957_s16  ;;  %p1115_p7 = por %p147_p13, %p44_p0 }
  0x35   : > { %s1476_s11 = scalar_select %p1103_p1, 1, 0 }
  0x36   : > { %p1111_p5 = por %p141_p10, %p1477_p4  ;;  %p154_p9 = scmp.lt.s32.totalorder %s965_s18, 3 }
  0x37   : > { %s1479_s6 = scalar_select %p1115_p7, 1, 0 }
  0x38   : > { %s1478_s30 = scalar_select %p1111_p5, 1, 0 }
  0x39   : > { %p1120_p11 = pnand %p652_p2, %p154_p9  ;;  %s970_s13 = smov [#allocation8]  }
  0x3a   : > { %s166_s14 = sshll.u32 %s970_s13, 4  ;;  %s1133_s27 = scalar_lea.hbm %s1450_s0, %s674_s25  ;;  %s1124_s14 = int_to_ptr.vmem [resolvable:$true] %s166_s14 }
  0x3b   : > { %s1480_s12 = scalar_select %p1120_p11, 1, 0 }
  0x3c   : > { %p697_p12 = pneg %p1120_p11  ;;  %s184_s10 = scalar_lea.vmem [#allocation2], %s655_s24 }
  0x3d   : > { %s191_s29 = sshll.u32 %s184_s10, 4  ;;  %s803_s22 = scalar_lea.hbm %s1453_s3, 64  ;;  %s1143_s29 = int_to_ptr.vmem [resolvable:$true] %s191_s29 }
  0x3e   : > { %p1137_p0 = pnand %p697_p12, %p1459_p3  ;;  %p804_p10 = scmp.ne.s32.totalorder %s1453_s3, %s803_s22 }
  0x3f   : > { %p810_p9 = scmp.lt.u32.totalorder %s803_s22, %s1453_s3 }
  0x40   : > { %p805_p13 = pneg %p1137_p0 }
  0x42   : > { %p806_p2 = pnand %p805_p13, %p804_p10 }
  0x44   : > { %p807_p4 = pneg %p806_p2 }
  0x46   : > { %p812_p12 = pnand %p810_p9, %p807_p4 }
  0x48   : > { %815 = shalt.err (!%p812_p12)
}
  0x49   : > { %s816_s24 = scalar_lea.vmem %s1124_s14, 64  ;;  %p824_p1 = scmp.lt.s32.totalorder %s1124_s14, %s1124_s14 }
  0x4a   : > { %p817_p3 = scmp.ne.s32.totalorder %s1124_s14, %s816_s24  ;;  %p825_p11 = scmp.lt.s32.totalorder %s816_s24, %s816_s24 }
  0x4c   : > { %p819_p7 = pnand %p817_p3, %p805_p13  ;;  %p826_p6 = por %p825_p11, %p824_p1 }
  0x4e   : > { %p820_p5 = pneg %p819_p7 }
  0x50   : > { %p827_p8 = pnand %p826_p6, %p820_p5 }
  0x52   : > { %830 = shalt.err (!%p827_p8)
}
  0x53   : > { %s971_s1 = smov 32   ;;  %s972_s17 = smov 2  }
  0x54   : > { %700 = dma.hbm_to_vmem [thread:$0]  (!%p1137_p0), %s1453_s3, 64, %s1124_s14, [#allocation9], %s971_s1, %s971_s1, %s972_s17  }
  0x55   : > { %s181_s10 = scalar_lea.sflag [#allocation3], %s1040_s23  ;;  %s831_s20 = scalar_lea.hbm %s1133_s27, 256 }
  0x56   : > { %p832_p6 = scmp.ne.s32.totalorder %s1133_s27, %s831_s20  ;;  %p1482_p8 = scmp.ne.s32.totalorder %s1475_s9, 0 }
  0x57   : > { %s836_s24 = scalar_lea.hbm %s1450_s0, 512  ;;  %p837_p5 = scmp.lt.u32.totalorder %s1133_s27, %s1450_s0 }
  0x58   : > { %p834_p3 = pnand %p832_p6, %p1482_p8  ;;  %p838_p7 = scmp.lt.u32.totalorder %s836_s24, %s831_s20 }
  0x59   : > { %p840_p10 = scmp.lt.u32.totalorder %s831_s20, %s1133_s27 }
  0x5a   : > { %p835_p1 = pneg %p834_p3  ;;  %p839_p11 = por %p838_p7, %p837_p5 }
  0x5c   : > { %p841_p13 = por %p840_p10, %p839_p11 }
  0x5e   : > { %p842_p2 = pnand %p841_p13, %p835_p1 }
  0x60   : > { %845 = shalt.err (!%p842_p2)
}
  0x61   : > { %s846_s14 = scalar_lea.vmem %s1143_s29, 256  ;;  %s973_s28 = smov [#allocation2]  }
  0x62   : > { %p847_p0 = scmp.ne.s32.totalorder %s1143_s29, %s846_s14  ;;  %s851_s22 = sshll.u32 %s973_s28, 4  ;;  %s852_s22 = int_to_ptr.vmem [resolvable:$false] %s851_s22 }
  0x63   : > { %s853_s19 = scalar_lea.vmem %s852_s22, 512  ;;  %p854_p12 = scmp.lt.s32.totalorder %s1143_s29, %s852_s22 }
  0x64   : > { %p849_p4 = pnand %p847_p0, %p1482_p8  ;;  %p855_p6 = scmp.lt.s32.totalorder %s853_s19, %s846_s14 }
  0x66   : > { %p850_p9 = pneg %p849_p4  ;;  %p856_p3 = por %p855_p6, %p854_p12 }
  0x68   : > { %p857_p5 = pnand %p856_p3, %p850_p9 }
  0x6a   : > { %860 = shalt.err (!%p857_p5)
}
  0x6b   : > { %p1483_p1 = scmp.ne.s32.totalorder %s1473_s26, 0  ;;  %s1484_s13 = smov 8  }
  0x6c   : > { %s1485_s5 = smov 128   ;;  %s676_s20 = sshll.u32 %s965_s18, 6 }
  0x6d   : > { %704 = dma.hbm_to_vmem [thread:$0]  (!%p1483_p1), %s1133_s27, 256, %s1143_s29, %s181_s10, %s1485_s5, %s1485_s5, %s1484_s13  }
  0x6e   : > { %s1486_s25 = sshll.u32 %s1040_s23, 2  ;;  %s1203_s22 = scalar_lea.hbm %s1452_s2, %s676_s20 }
  0x6f   : > { %s226_s21 = scalar_lea.vmem [#allocation7], %s1486_s25  ;;  %s861_s19 = scalar_lea.hbm %s1203_s22, 64 }
  0x70   : > { %s233_s24 = sshll.u32 %s226_s21, 4  ;;  %p862_p7 = scmp.ne.s32.totalorder %s1203_s22, %s861_s19  ;;  %s1205_s24 = int_to_ptr.vmem [resolvable:$true] %s233_s24 }
  0x71   : > { %s866_s27 = scalar_lea.hbm %s1452_s2, 128  ;;  %p867_p13 = scmp.lt.u32.totalorder %s1203_s22, %s1452_s2 }
  0x72   : > { %p864_p11 = pnand %p862_p7, %p1482_p8  ;;  %p868_p2 = scmp.lt.u32.totalorder %s866_s27, %s861_s19 }
  0x73   : > { %p870_p4 = scmp.lt.u32.totalorder %s861_s19, %s1203_s22 }
  0x74   : > { %p865_p10 = pneg %p864_p11  ;;  %p869_p0 = por %p868_p2, %p867_p13 }
  0x76   : > { %p871_p9 = por %p870_p4, %p869_p0 }
  0x78   : > { %p872_p12 = pnand %p871_p9, %p865_p10 }
  0x7a   : > { %875 = shalt.err (!%p872_p12)
}
  0x7b   : > { %s876_s5 = scalar_lea.vmem %s1205_s24, 64  ;;  %s974_s20 = smov [#allocation7]  }
  0x7c   : > { %p877_p6 = scmp.ne.s32.totalorder %s1205_s24, %s876_s5  ;;  %s881_s25 = sshll.u32 %s974_s20, 4  ;;  %s882_s25 = int_to_ptr.vmem [resolvable:$false] %s881_s25 }
  0x7d   : > { %s883_s21 = scalar_lea.vmem %s882_s25, 128  ;;  %p884_p7 = scmp.lt.s32.totalorder %s1205_s24, %s882_s25 }
  0x7e   : > { %p879_p3 = pnand %p877_p6, %p1482_p8  ;;  %p885_p11 = scmp.lt.s32.totalorder %s883_s21, %s876_s5 }
  0x80   : > { %p880_p5 = pneg %p879_p3  ;;  %p886_p13 = por %p885_p11, %p884_p7 }
  0x82   : > { %p887_p2 = pnand %p886_p13, %p880_p5 }
  0x84   : > { %890 = shalt.err (!%p887_p2)
}
  0x85   : > { %710 = dma.hbm_to_vmem [thread:$0]  (!%p1483_p1), %s1203_s22, 64, %s1205_s24, %s1060_s7, %s971_s1, %s971_s1, %s972_s17  }
  0x86   : > { %p1487_p8 = scmp.ne.s32.totalorder %s1480_s12, 0 }
  0x87   : > { %s1235_s9 = sand.u32 (!%p1487_p8), 1, %s957_s16   ;;  %p1488_p10 = scmp.ne.s32.totalorder (!%p1487_p8), %s1476_s11, 0 }
  0x88   : > { %245 = sbr.rel (%p1487_p8) target bundleno = 368 (0x170), region = 36  ;;  %s665_s14 = sshll.u32 (!%p1487_p8), %s1235_s9, 4 }
  0x89   : > { %s248_s28 = scalar_lea.sflag (!%p1487_p8), [#allocation3], %s1235_s9  ;;  %s251_s19 = scalar_lea.vmem (!%p1487_p8), [#allocation2], %s665_s14 }
  0x8f   : > { %936 = dma.done.wait (%p1488_p10), %s248_s28, 256  }
  0x90   : > { %938 = vsyncadd (%p1488_p10), %s248_s28, 4294967040  ;;  %s256_s26 = sand.u32 1, %s1094_s8   ;;  %s260_s12 = scalar_lea.vmem [#allocation5], %s665_s14 }
  0x91   : > { %s257_s7 = scalar_lea.sflag [#allocation6], %s256_s26 }
  0x92   : > { %940 = dma.done.wait (%p1488_p10), %s257_s7, 320  }
  0x93   : > { %942 = vsyncadd (%p1488_p10), %s257_s7, 4294966976  ;;  %s667_s1 = sshll.u32 %s1235_s9, 2  ;;  %p1489_p1 = scmp.eq.s32.totalorder %s1094_s8, 0 }
  0x94   : > { %s269_s17 = scalar_lea.vmem [#allocation7], %s667_s1 }
  0x95   : > { %944 = dma.done.wait (%p1489_p1), [#allocation9], 64   ;;  %p1490_p0 = pmov %p1489_p1 }
  0x96   : > { %v310_v0 = vld [vmem:[%s260_s12] sm:$0xff]  ;;  %s975_s24 = smov 1   ;;  %v311_v3 = vld [vmem:[%s260_s12 + $0x8] sm:$0xff]  ;;  %v330_v9 = vlaneseq  ;;  %vm509_vm9 = vcmask 1040384   ;;  %s671_s11 = sshll.u32 %s1094_s8, 6  ;;  %vm511_vm10 = vcmask 1041408  }
  0x97   : > { %946 = vsyncadd (%p1490_p0), [#allocation9], 4294967232  ;;  %v308_v1 = vld [vmem:[%s251_s19] sm:$0xff]  ;;  %393 = vrot.lane.b32.xlu1 %v310_v0, %s975_s24  ;;  %v309_v4 = vld [vmem:[%s251_s19 + $0x8] sm:$0xff]  ;;  %v397_v21 = vrot.slane %v310_v0, 7  ;;  %v398_v22 = vrot.slane %v311_v3, 7  ;;  %s1406_s10 = scalar_lea.hbm %s1454_s4, %s671_s11 }
  0x98   : > { %324 = vrot.lane.b32.xlu0 %v308_v1, %s975_s24  ;;  %v678_v2 = vld [vmem:[%s269_s17] sm:$0xf]   ;;  %v1267_v16 = vshrl.u32 %v330_v9, 7  ;;  %v328_v24 = vrot.slane %v308_v1, 7  ;;  %v329_v25 = vrot.slane %v309_v4, 7  ;;  %s307_s22 = scalar_lea.vmem [#allocation10], %s667_s1 }
  0x99   : > { %v680_v5 = vunpack.c.1.s8 %v678_v2  ;;  %v679_v6 = vunpack.c.0.s8 %v678_v2  ;;  %v682_v55 = vld [vmem:[#allocation8] sm:$0xf]   ;;  %s528_s29 = sshll.u32 %s307_s22, 4  ;;  %s515_s8 = scalar_lea.sflag [#allocation4], %s1235_s9  ;;  %s1408_s29 = int_to_ptr.vmem [resolvable:$true] %s528_s29 }
  0x9a   : > { %vm332_vm0 = vcmp.lt.s32.totalorder %v1267_v16, 1  ;;  %v684_v63 = vunpack.c.1.s8 %v682_v55  ;;  %s891_s13 = scalar_lea.vmem %s1408_s29, 64  ;;  %p1491_p9 = scmp.ne.s32.totalorder %s1478_s30, 0 }
  0x9b   : > { %395 = vrot.lane.b32.xlu1 %v311_v3, %s975_s24  ;;  %v1255_v7 = vcvt.s32.f32 %v680_v5  ;;  %v1257_v8 = vcvt.s32.f32 %v679_v6  ;;  %v400_v27 = vsel %vm332_vm0, %v398_v22, %v397_v21  ;;  %v334_v28 = vsel %vm332_vm0, %v329_v25, %v328_v24  ;;  %p892_p4 = scmp.ne.s32.totalorder %s1408_s29, %s891_s13  ;;  %s976_s5 = smov [#allocation10]  }
  0x9c   : > { %326 = vrot.lane.b32.xlu0 %v309_v4, %s975_s24  ;;  %v403_v29 = vsub.f32 %v310_v0, %v400_v27  ;;  %v399_v31 = vsel %vm332_vm0, %v397_v21, %v398_v22  ;;  %v337_v32 = vsub.f32 %v308_v1, %v334_v28  ;;  %v333_v34 = vsel %vm332_vm0, %v328_v24, %v329_v25  ;;  %s895_s20 = sshll.u32 %s976_s5, 4  ;;  %s896_s20 = int_to_ptr.vmem [resolvable:$false] %s895_s20 }
  0x9d   : > { %v404_v37 = vsub.f32 %v311_v3, %v399_v31  ;;  %v338_v40 = vsub.f32 %v309_v4, %v333_v34  ;;  %v463_v2 = vrot.slane %v1257_v8, 7  ;;  %p893_p12 = pnand %p892_p4, %p1491_p9  ;;  %s897_s25 = scalar_lea.vmem %s896_s20, 128 }
  0x9e   : > { %p898_p3 = scmp.lt.s32.totalorder %s1408_s29, %s896_s20  ;;  %p899_p5 = scmp.lt.s32.totalorder %s897_s25, %s891_s13 }
  0x9f   : > { %461 = vrot.lane.b32.xlu1 %v1255_v7, %s975_s24  ;;  %v408_v6 = vmul.f32 %v404_v37, %v404_v37  ;;  %v342_v22 = vmul.f32 %v338_v40, %v338_v40  ;;  %p894_p6 = pneg %p893_p12 }
  0xa0   : > { %459 = vrot.lane.b32.xlu0 %v1257_v8, %s975_s24  ;;  %p900_p7 = por %p899_p5, %p898_p3 }
  0xa2   : > { %p901_p11 = pnand %p900_p7, %p894_p6 }
 0x109   : > { %v394_v10 = vpop.permute.xlu1 %393 }
 0x10a   : > { %v325_v11 = vpop.permute.xlu0 %324  ;;  %v1261_v12 = vsub.f32 %v310_v0, %v394_v10  ;;  %v683_v10 = vunpack.c.0.s8 %v682_v55 }
 0x10b   : > { %v1263_v13 = vsub.f32 %v308_v1, %v325_v11  ;;  %v407_v11 = vmul.f32 %v403_v29, %v403_v29 }
 0x10c   : > { %v411_v14 = vadd.f32 1e-10, %v1261_v12 }
 0x10d   : > { %v345_v15 = vadd.f32 1e-10, %v1263_v13  ;;  %v396_v17 = vpop.permute.xlu1 %395 }
 0x10e   : > { %v327_v18 = vpop.permute.xlu0 %326  ;;  %757 = vrcp.f32 %v411_v14  ;;  %v1269_v19 = vsub.f32 %v311_v3, %v396_v17  ;;  %v464_v3 = vrot.slane %v1255_v7, 7 }
 0x10f   : > { %759 = vrcp.f32 %v345_v15  ;;  %v1271_v20 = vsub.f32 %v309_v4, %v327_v18 }
 0x110   : > { %v412_v23 = vadd.f32 1e-10, %v1269_v19  ;;  %v406_v15 = vmul.f32 %v1269_v19, %v1269_v19  ;;  %v465_v27 = vsel %vm332_vm0, %v463_v2, %v464_v3  ;;  %v405_v19 = vmul.f32 %v1261_v12, %v1261_v12 }
 0x111   : > { %v346_v26 = vadd.f32 1e-10, %v1271_v20  ;;  %v340_v21 = vmul.f32 %v1271_v20, %v1271_v20  ;;  %v323_v12 = vcvt.s32.f32 %v684_v63 }
 0x112   : > { %761 = vrcp.f32 %v412_v23  ;;  %v462_v23 = vpop.permute.xlu1 %461  ;;  %v410_v34 = vadd.f32 %v408_v6, %v406_v15 }
 0x113   : > { %763 = vrcp.f32 %v346_v26  ;;  %v341_v26 = vmul.f32 %v337_v32, %v337_v32 }
 0x118   : > { %v758_v30 = vpop.eup %757 }
 0x119   : > { %v760_v33 = vpop.eup %759  ;;  %v1284_v35 = vmul.f32 %v758_v30, %v403_v29  ;;  %v460_v29 = vpop.permute.xlu0 %459  ;;  %v339_v30 = vmul.f32 %v1263_v13, %v1263_v13  ;;  %v466_v13 = vsel %vm332_vm0, %v464_v3, %v463_v2 }
 0x11a   : > { %v1286_v36 = vmul.f32 %v760_v33, %v337_v32  ;;  %v468_v32 = vmul.f32 %v462_v23, %v1255_v7 }
 0x11b   : > { %v1289_v38 = vand.u32 2147483647, %v1284_v35  ;;  %v343_v55 = vadd.f32 %v341_v26, %v339_v30  ;;  %vm453_vm5 = vcmp.lt.f32.partialorder %v1284_v35, 0.0 }
 0x11c   : > { %v762_v39 = vpop.eup %761  ;;  %v1292_v41 = vand.u32 2147483647, %v1286_v36  ;;  %vm387_vm6 = vcmp.lt.f32.partialorder %v1286_v36, 0.0 }
 0x11d   : > { %v764_v42 = vpop.eup %763  ;;  %765 = vrcp.f32 %v1289_v38  ;;  %v1295_v43 = vmul.f32 %v762_v39, %v404_v37  ;;  %vm419_vm1 = vcmp.gt.f32.partialorder %v1289_v38, 1.0 }
 0x11e   : > { %767 = vrcp.f32 %v1292_v41  ;;  %v1298_v44 = vmul.f32 %v764_v42, %v338_v40  ;;  %vm353_vm2 = vcmp.gt.f32.partialorder %v1292_v41, 1.0  ;;  %v344_v40 = vadd.f32 %v342_v22, %v340_v21 }
 0x11f   : > { %v1301_v45 = vand.u32 2147483647, %v1295_v43  ;;  %vm454_vm7 = vcmp.lt.f32.partialorder %v1295_v43, 0.0 }
 0x120   : > { %v1304_v46 = vand.u32 2147483647, %v1298_v44  ;;  %vm388_vm8 = vcmp.lt.f32.partialorder %v1298_v44, 0.0 }
 0x121   : > { %769 = vrcp.f32 %v1301_v45  ;;  %vm420_vm3 = vcmp.gt.f32.partialorder %v1301_v45, 1.0 }
 0x122   : > { %771 = vrcp.f32 %v1304_v46  ;;  %vm354_vm4 = vcmp.gt.f32.partialorder %v1304_v46, 1.0 }
 0x127   : > { %v766_v47 = vpop.eup %765 }
 0x128   : > { %v768_v48 = vpop.eup %767  ;;  %v1312_v49 = vsel %vm419_vm1, %v766_v47, %v1289_v38  ;;  %v467_v47 = vmul.f32 %v460_v29, %v1257_v8  ;;  %v474_v8 = vsub.f32 %v344_v40, %v410_v34 }
 0x129   : > { %v1317_v50 = vmul.f32 %v1312_v49, %v1312_v49  ;;  %v1322_v51 = vsel %vm353_vm2, %v768_v48, %v1292_v41 }
 0x12a   : > { %v1326_v52 = vmul.f32 %v1322_v51, %v1322_v51  ;;  %v469_v6 = vmul.f32 %v467_v47, %v466_v13 }
 0x12b   : > { %v770_v53 = vpop.eup %769  ;;  %v427_v54 = vmul.f32 -0.0117212, %v1317_v50 }
 0x12c   : > { %v772_v56 = vpop.eup %771  ;;  %v361_v57 = vmul.f32 -0.0117212, %v1326_v52  ;;  %v1335_v58 = vsel %vm420_vm3, %v770_v53, %v1301_v45 }
 0x12d   : > { %v429_v59 = vadd.f32 0.05265332, %v427_v54  ;;  %v1340_v60 = vsel %vm354_vm4, %v772_v56, %v1304_v46  ;;  %v1344_v61 = vmul.f32 %v1335_v58, %v1335_v58  ;;  %v409_v54 = vadd.f32 %v407_v11, %v405_v19 }
 0x12e   : > { %v363_v62 = vadd.f32 0.05265332, %v361_v57  ;;  %v1348_v0 = vmul.f32 %v1340_v60, %v1340_v60 }
 0x12f   : > { %v431_v1 = vmul.f32 %v429_v59, %v1317_v50  ;;  %v428_v4 = vmul.f32 -0.0117212, %v1344_v61  ;;  %v473_v2 = vsub.f32 %v343_v55, %v409_v54 }
 0x130   : > { %v365_v5 = vmul.f32 %v363_v62, %v1326_v52  ;;  %v362_v9 = vmul.f32 -0.0117212, %v1348_v0  ;;  %v470_v62 = vmul.f32 %v468_v32, %v465_v27 }
 0x131   : > { %v433_v14 = vadd.f32 -0.11643287, %v431_v1  ;;  %v430_v17 = vadd.f32 0.05265332, %v428_v4  ;;  %v322_v1 = vcvt.s32.f32 %v683_v10 }
 0x132   : > { %v367_v18 = vadd.f32 -0.11643287, %v365_v5  ;;  %v364_v24 = vadd.f32 0.05265332, %v362_v9  ;;  %v472_v15 = vmul.f32 %v470_v62, %v323_v12 }
 0x133   : > { %v435_v25 = vmul.f32 %v433_v14, %v1317_v50  ;;  %v432_v28 = vmul.f32 %v430_v17, %v1344_v61  ;;  %v471_v10 = vmul.f32 %v469_v6, %v322_v1 }
 0x134   : > { %v369_v20 = vmul.f32 %v367_v18, %v1326_v52  ;;  %v366_v31 = vmul.f32 %v364_v24, %v1348_v0  ;;  %v476_v18 = vand.u32 2147483647, %v474_v8  ;;  %v475_v24 = vand.u32 2147483647, %v473_v2 }
 0x135   : > { %v437_v33 = vadd.f32 0.19354346, %v435_v25  ;;  %v434_v37 = vadd.f32 -0.11643287, %v432_v28  ;;  %v501_v32 = vadd.f32 %v472_v15, %v471_v10 }
 0x136   : > { %v371_v39 = vadd.f32 0.19354346, %v369_v20  ;;  %v368_v42 = vadd.f32 -0.11643287, %v366_v31  ;;  %v478_v28 = vmul.f32 %v476_v18, %v472_v15  ;;  %v477_v19 = vmul.f32 %v475_v24, %v471_v10 }
 0x137   : > { %v439_v48 = vmul.f32 %v437_v33, %v1317_v50  ;;  %v436_v53 = vmul.f32 %v434_v37, %v1344_v61  ;;  %v502_v47 = vrot.slane %v501_v32, 4 }
 0x138   : > { %v373_v56 = vmul.f32 %v371_v39, %v1326_v52  ;;  %v370_v57 = vmul.f32 %v368_v42, %v1348_v0  ;;  %v485_v37 = vadd.f32 %v478_v28, %v477_v19 }
 0x139   : > { %v441_v7 = vadd.f32 -0.33262348, %v439_v48  ;;  %v438_v59 = vadd.f32 0.19354346, %v436_v53  ;;  %v503_v13 = vadd.f32 %v502_v47, %v501_v32 }
 0x13a   : > { %v375_v4 = vadd.f32 -0.33262348, %v373_v56  ;;  %v372_v5 = vadd.f32 0.19354346, %v370_v57  ;;  %v486_v36 = vrot.slane %v485_v37, 4 }
 0x13b   : > { %v443_v63 = vmul.f32 %v441_v7, %v1317_v50  ;;  %v440_v9 = vmul.f32 %v438_v59, %v1344_v61  ;;  %v504_v57 = vrot.slane %v503_v13, 2 }
 0x13c   : > { %v377_v16 = vmul.f32 %v375_v4, %v1326_v52  ;;  %v374_v3 = vmul.f32 %v372_v5, %v1348_v0  ;;  %v487_v53 = vadd.f32 %v486_v36, %v485_v37 }
 0x13d   : > { %v445_v11 = vadd.f32 0.99997723, %v443_v63  ;;  %v442_v14 = vadd.f32 -0.33262348, %v440_v9  ;;  %v505_v44 = vadd.f32 %v504_v57, %v503_v13 }
 0x13e   : > { %v379_v17 = vadd.f32 0.99997723, %v377_v16  ;;  %v376_v21 = vadd.f32 -0.33262348, %v374_v3  ;;  %v488_v55 = vrot.slane %v487_v53, 2 }
 0x13f   : > { %v447_v22 = vmul.f32 %v445_v11, %v1312_v49  ;;  %v444_v23 = vmul.f32 %v442_v14, %v1344_v61  ;;  %v506_v8 = vrot.slane %v505_v44, 1 }
 0x140   : > { %v381_v50 = vmul.f32 %v379_v17, %v1322_v51  ;;  %v378_v25 = vmul.f32 %v376_v21, %v1348_v0  ;;  %v489_v43 = vadd.f32 %v488_v55, %v487_v53 }
 0x141   : > { %v446_v52 = vadd.f32 0.99997723, %v444_v23  ;;  %v449_v26 = vsub.f32 1.5707964, %v447_v22  ;;  %v507_v9 = vadd.f32 %v506_v8, %v505_v44 }
 0x142   : > { %v380_v27 = vadd.f32 0.99997723, %v378_v25  ;;  %v383_v29 = vsub.f32 1.5707964, %v381_v50  ;;  %v490_v4 = vrot.slane %v489_v43, 1 }
 0x143   : > { %v448_v30 = vmul.f32 %v446_v52, %v1335_v58  ;;  %v451_v20 = vsel %vm419_vm1, %v449_v26, %v447_v22 }
 0x144   : > { %v382_v49 = vmul.f32 %v380_v27, %v1340_v60  ;;  %v455_v31 = vsub.f32 0.0, %v451_v20  ;;  %v385_v51 = vsel %vm353_vm2, %v383_v29, %v381_v50  ;;  %v491_v6 = vadd.f32 %v490_v4, %v489_v43 }
 0x145   : > { %v450_v61 = vsub.f32 1.5707964, %v448_v30  ;;  %v389_v0 = vsub.f32 0.0, %v385_v51 }
 0x146   : > { %v384_v33 = vsub.f32 1.5707964, %v382_v49  ;;  %v457_v34 = vsel %vm453_vm5, %v455_v31, %v451_v20 }
 0x147   : > { %v452_v58 = vsel %vm420_vm3, %v450_v61, %v448_v30  ;;  %v391_v38 = vsel %vm387_vm6, %v389_v0, %v385_v51 }
 0x148   : > { %v386_v60 = vsel %vm354_vm4, %v384_v33, %v382_v49  ;;  %v456_v39 = vsub.f32 0.0, %v452_v58  ;;  %v479_v41 = vsub.f32 %v391_v38, %v457_v34 }
 0x149   : > { %v390_v40 = vsub.f32 0.0, %v386_v60 }
 0x14a   : > { %v458_v35 = vsel %vm454_vm7, %v456_v39, %v452_v58  ;;  %v481_v12 = vand.u32 2147483647, %v479_v41 }
 0x14b   : > { %v392_v42 = vsel %vm388_vm8, %v390_v40, %v386_v60 }
 0x14c   : > { %v480_v48 = vsub.f32 %v392_v42, %v458_v35  ;;  %v483_v46 = vmul.f32 %v481_v12, %v471_v10 }
 0x14e   : > { %v482_v45 = vand.u32 2147483647, %v480_v48 }
 0x150   : > { %v484_v54 = vmul.f32 %v482_v45, %v472_v15 }
 0x152   : > { %v493_v56 = vadd.f32 %v484_v54, %v483_v46 }
 0x154   : > { %v494_v7 = vrot.slane %v493_v56, 4 }
 0x156   : > { %v495_v59 = vadd.f32 %v494_v7, %v493_v56 }
 0x158   : > { %v496_v62 = vrot.slane %v495_v59, 2 }
 0x15a   : > { %v497_v1 = vadd.f32 %v496_v62, %v495_v59 }
 0x15c   : > { %v498_v5 = vrot.slane %v497_v1, 1 }
 0x15e   : > { %v499_v63 = vadd.f32 %v498_v5, %v497_v1 }
 0x160   : > { %v510_v16 = vsel %vm509_vm9, %v491_v6, %v499_v63 }
 0x161   : > { %v512_v2 = vsel %vm511_vm10, %v510_v16, %v507_v9 }
 0x162   : > { %513 = vst [vmem:[%s307_s22] sm:$0x7] %v512_v2 }
 0x163   : > { %904 = shalt.err (!%p901_p11)
}
 0x164   : > { %s905_s21 = scalar_lea.hbm %s1406_s10, 64  ;;  %s909_s28 = scalar_lea.hbm %s1454_s4, 128 }
 0x165   : > { %p906_p13 = scmp.ne.s32.totalorder %s1406_s10, %s905_s21  ;;  %p910_p10 = scmp.lt.u32.totalorder %s1406_s10, %s1454_s4 }
 0x166   : > { %p911_p1 = scmp.lt.u32.totalorder %s909_s28, %s905_s21  ;;  %p913_p4 = scmp.lt.u32.totalorder %s905_s21, %s1406_s10 }
 0x167   : > { %p907_p2 = pnand %p906_p13, %p1491_p9 }
 0x168   : > { %p912_p0 = por %p911_p1, %p910_p10 }
 0x169   : > { %p908_p8 = pneg %p907_p2 }
 0x16a   : > { %p914_p12 = por %p913_p4, %p912_p0 }
 0x16c   : > { %p915_p6 = pnand %p914_p12, %p908_p8 }
 0x16e   : > { %918 = shalt.err (!%p915_p6)
}
 0x16f   : > { %695 = dma.vmem_to_hbm [thread:$0]  (%p1491_p9), %s1408_s29, 64, %s1406_s10, %s515_s8  }
 0x170 PF: > { %s540_s7 = sand.u32 1, %s953_s15   ;;  %p1492_p3 = scmp.ne.s32.totalorder %s1479_s6, 0 }
 0x171   : > { %p1493_p5 = scmp.ge.s32.totalorder %s965_s18, 2  ;;  %s541_s12 = scalar_lea.sflag [#allocation4], %s540_s7 }
 0x173   : > { %p712_p7 = pnand %p1493_p5, %p1492_p3 }
 0x175   : > { %948 = dma.done.wait (!%p712_p7), %s541_s12, 64  }
 0x176   : > { %950 = vsyncadd (!%p712_p7), %s541_s12, 4294967232  ;;  %s1494_s18 = sld [smem:[#allocation16_spill]]  ;;  %s1495_s1 = sld [smem:[#allocation15_spill]] }
 0x177   : > { %s1496_s17 = sld [smem:[#allocation17_spill]]  ;;  %s1497_s15 = smov %s957_s16 }
 0x17c   : > { %p21_p11 = scmp.ge.s32.totalorder %s1494_s18, 4   ;;  %s1498_s16 = smov %s1495_s1 }
 0x17e   :  { %23 = sbr.rel (!%p21_p11) target bundleno = 10 (0xa), region = 109 }
 0x185   :  { %546 = vsyncpa [#allocation3], 1 }
 0x186   :  { %548 = vsyncpa [#allocation3 + $0x1], 1 }
 0x187   :  { %549 = vsyncpa [#allocation6], 1 }
 0x188   :  { %551 = vsyncpa [#allocation6 + $0x1], 1 }
 0x189   :  { %552 = vsyncpa [#allocation9], 1 }
 0x18a   :  { %553 = vsyncpa [#allocation4], 1 }
 0x18b   :  { %555 = vsyncpa [#allocation4 + $0x1], 1 }

</bundles_post_ra>
